<compile_context>
chip_gen: v7x
topology: tpu7x:2x2x1
jax: 0.10.0
libtpu: 0.0.40
codegen_flags: <defaults>
</compile_context>

<pallas_src>
import jax
import jax.numpy as jnp
from jax import lax
from jax.experimental import pallas as pl
from jax.experimental.pallas import tpu as pltpu


def embednet_kernel(ids_ref, tab_ref, w_ref, b_ref, out_ref, acc_ref):
    # ids_ref : [S, B_T]      int32  token ids for this batch tile
    # tab_ref : [D_pad, V_T]  bf16   vocab tile of the transposed, zero-padded table
    # w_ref   : [O, D_pad]    f32    linear weight, pre-scaled by 1/S
    # b_ref   : [O, 1]        f32    linear bias
    # out_ref : [O, B_T]      f32    sigmoid(logits), batch on the lane axis
    # acc_ref : [D_pad, B_T]  f32    running sum_s E[ids[s, b]] (transposed layout)
    v = pl.program_id(1)
    n_vt = pl.num_programs(1)
    seq_len, b_t = ids_ref.shape
    d_pad, v_t = tab_ref.shape

    @pl.when(v == 0)
    def _():
        acc_ref[...] = jnp.zeros_like(acc_ref)

    # counts[vt, b] = #{ s : ids[s, b] == v * V_T + vt }
    # Built with full-tile compares: each id row [1, B_T] sublane-broadcasts
    # against a vocab iota [V_T, B_T]; no relayouts, no per-row DMAs.
    vocab_ids = v * v_t + lax.broadcasted_iota(jnp.int32, (v_t, b_t), 0)

    def s_body(s, counts):
        ids_row = ids_ref[pl.ds(s, 1), :]                      # [1, B_T]
        return counts + (ids_row == vocab_ids).astype(jnp.float32)

    counts = jnp.zeros((v_t, b_t), jnp.float32)
    if seq_len <= 32:
        # Short sequences: fully unrolled at trace time (static slices only).
        for s in range(seq_len):
            counts = s_body(s, counts)
    else:
        counts = lax.fori_loop(0, seq_len, s_body, counts, unroll=8)

    # Partial bag-of-embeddings sum for this vocab tile on the MXU:
    #   acc[d, b] += sum_vt table^T[d, vt] * counts[vt, b]
    acc_ref[...] += jnp.dot(tab_ref[...].astype(jnp.float32), counts,
                            preferred_element_type=jnp.float32)

    @pl.when(v == n_vt - 1)
    def _():
        # (W / S) @ acc -> [O, B_T]; the 1/S mean is already folded into w_ref.
        logits = jnp.dot(w_ref[...], acc_ref[...],
                         preferred_element_type=jnp.float32) + b_ref[...]
        out_ref[...] = 1.0 / (1.0 + jnp.exp(-logits))          # sigmoid


def _round_up(x, m):
    return (x + m - 1) // m * m


def embednet_forward(indices, emb_table, lin_w, lin_b):
    """EmbedNet forward pass.

    indices:   [S, B] int  (seq-major, like the torch module's `inp`)
    emb_table: [V, D] float (nn.Embedding weight)
    lin_w:     [O, D] float, lin_b: [O] float (nn.Linear weight / bias)
    returns:   [B] if O == 1 else [B, O]     (torch `out.squeeze(-1)`)
    """
    S, B = indices.shape
    V, D = emb_table.shape
    O = lin_w.shape[0]

    D_pad = _round_up(D, 128)

    # Batch tiling: a single full tile for small B (block == full dims is always
    # tile-legal); otherwise 256-wide lane-dense tiles so the "parallel" grid
    # axis lets v7x megacore split batch tiles across its two TensorCores.
    if B <= 256:
        B_T = B_pad = B
    else:
        B_T = 256
        B_pad = _round_up(B, B_T)
    n_bt = B_pad // B_T

    # Vocab tiling of the transposed bf16 table.  Fast path: whole table is one
    # VMEM-resident tile.  Otherwise stream ~1 MiB lane-aligned tiles.
    tile_budget = 1 << 20                       # bf16 bytes per streamed table tile
    if V * D_pad * 2 <= tile_budget:
        V_T = V_pad = V
    else:
        V_T = max(128, min(512, (tile_budget // (2 * D_pad)) // 128 * 128))
        V_pad = _round_up(V, V_T)
    n_vt = V_pad // V_T

    # Operand prep (plain JAX, negligible).
    ids = indices.astype(jnp.int32)
    if B_pad != B:
        # Padded batch columns compute garbage that is sliced off below.
        ids = jnp.pad(ids, ((0, 0), (0, B_pad - B)))
    # bf16 table, transposed to [D_pad, V_pad] so every kernel matmul is a
    # standard contraction; zero-padded rows/cols are inert.
    tab_t = jnp.pad(emb_table, ((0, V_pad - V), (0, D_pad - D))).astype(jnp.bfloat16).T
    w_scaled = jnp.pad(lin_w.astype(jnp.float32) * (1.0 / S), ((0, 0), (0, D_pad - D)))
    bias2 = lin_b.astype(jnp.float32).reshape(O, 1)

    cost = pl.CostEstimate(
        flops=(2 * n_bt * V_pad * D_pad * B_T      # counts @ table per batch tile
               + 2 * n_bt * O * D_pad * B_T        # final projection
               + n_bt * S * V_pad * B_T),          # one-hot compares (VPU)
        transcendentals=n_bt * O * B_T,
        bytes_accessed=(S * B_pad * 4              # ids (fetched once per batch tile)
                        + n_bt * V_pad * D_pad * 2 # bf16 table, streamed per batch tile
                        + O * D_pad * 4 + O * 4    # weight + bias (fetched once)
                        + O * B_pad * 4),          # output
    )

    out = pl.pallas_call(
        embednet_kernel,
        out_shape=jax.ShapeDtypeStruct((O, B_pad), jnp.float32),
        grid_spec=pltpu.PrefetchScalarGridSpec(
            num_scalar_prefetch=0,
            grid=(n_bt, n_vt),
            in_specs=[
                pl.BlockSpec((S, B_T), lambda b, v: (0, b)),      # ids, per batch tile
                pl.BlockSpec((D_pad, V_T), lambda b, v: (0, v)),  # table tile (streamed)
                pl.BlockSpec((O, D_pad), lambda b, v: (0, 0)),    # weight (grid-constant)
                pl.BlockSpec((O, 1), lambda b, v: (0, 0)),        # bias  (grid-constant)
            ],
            out_specs=pl.BlockSpec((O, B_T), lambda b, v: (0, b)),
            scratch_shapes=[pltpu.VMEM((D_pad, B_T), jnp.float32)],
        ),
        compiler_params=pltpu.CompilerParams(
            dimension_semantics=("parallel", "arbitrary"),
            vmem_limit_bytes=32 * 1024 * 1024,     # explicit budget, v7x-safe
        ),
        cost_estimate=cost,
    )(ids, tab_t, w_scaled, bias2)

    out = out[:, :B]                               # drop padded batch columns
    # torch: out.squeeze(-1)
    return out.reshape(B) if O == 1 else out.T


def embednet_reference(indices, emb_table, lin_w, lin_b):
    embed_out = emb_table[indices]                 # [S, B, D]
    embed_out = embed_out.mean(axis=0)             # [B, D]
    out = embed_out @ lin_w.T + lin_b              # [B, O]
    out = jax.nn.sigmoid(out)
    return jnp.squeeze(out, axis=-1) if out.shape[-1] == 1 else out


if __name__ == "__main__":
    # Small shapes: vocab=32, embed_dim=32, output_dim=1, seq=8, batch=4.
    V, D, O = 32, 32, 1
    S, B = 8, 4

    key = jax.random.PRNGKey(0)
    k_emb, k_w, k_b, k_idx = jax.random.split(key, 4)

    emb_table = jax.random.normal(k_emb, (V, D), dtype=jnp.float32)
    lin_w = jax.random.normal(k_w, (O, D), dtype=jnp.float32) * 0.1
    lin_b = jax.random.normal(k_b, (O,), dtype=jnp.float32) * 0.1
    indices = jax.random.randint(k_idx, (S, B), 0, V, dtype=jnp.int32)

    out = jax.block_until_ready(embednet_forward(indices, emb_table, lin_w, lin_b))

    # Strict check vs. a reference using the same bf16-rounded table the kernel
    # stores in HBM (the only intended numerical difference).
    tab_bf16 = emb_table.astype(jnp.bfloat16).astype(jnp.float32)
    ref = embednet_reference(indices, tab_bf16, lin_w, lin_b)
    assert out.shape == ref.shape, (out.shape, ref.shape)
    assert jnp.allclose(out, ref, atol=1e-5, rtol=1e-5), (out, ref)

    # Loose sanity check vs. the full-f32 reference (bounds bf16 table rounding).
    ref_f32 = embednet_reference(indices, emb_table, lin_w, lin_b)
    assert jnp.allclose(out, ref_f32, atol=5e-2), (out, ref_f32)

    print("KERNEL_OK")
</pallas_src>

<mosaic_0001>
module attributes {stable_mosaic.version = 11 : i64} {
  func.func @embednet_kernel(%arg0: i32, %arg1: i32, %arg2: memref<8x4xi32, #tpu.memory_space<vmem>>, %arg3: memref<128x32xbf16, #tpu.memory_space<vmem>>, %arg4: memref<1x128xf32, #tpu.memory_space<vmem>>, %arg5: memref<1x1xf32, #tpu.memory_space<vmem>>, %arg6: memref<1x4xf32, #tpu.memory_space<vmem>>, %arg7: memref<128x4xf32, #tpu.memory_space<vmem>>) attributes {dimension_semantics = [#tpu.dimension_semantics<parallel>, #tpu.dimension_semantics<arbitrary>], iteration_bounds = array<i64: 1, 1>, scalar_prefetch = 0 : i64, scratch_operands = 1 : i64, tpu.core_type = #tpu.core_type<tc>, window_params = [{transform_indices = @transform_0, window_bounds = array<i64: 8, 4>}, {transform_indices = @transform_1, window_bounds = array<i64: 128, 32>}, {pipeline_mode = #tpu.pipeline_mode<synchronous>, transform_indices = @transform_2, window_bounds = array<i64: 1, 128>}, {pipeline_mode = #tpu.pipeline_mode<synchronous>, transform_indices = @transform_3, window_bounds = array<i64: 1, 1>}, {transform_indices = @transform_4, window_bounds = array<i64: 1, 4>}]} {
    %c0_i32 = arith.constant 0 : i32
    %0 = arith.cmpi eq, %arg1, %c0_i32 : i32
    %1 = arith.extui %0 : i1 to i32
    %c0_i32_0 = arith.constant 0 : i32
    %2 = arith.cmpi ne, %1, %c0_i32_0 : i32
    scf.if %2 {
      %cst_18 = arith.constant 0.000000e+00 : f32
      %65 = vector.broadcast %cst_18 : f32 to vector<128x4xf32>
      %c0_19 = arith.constant 0 : index
      %c0_20 = arith.constant 0 : index
      %66 = vector.load %arg7[%c0_19, %c0_20] : memref<128x4xf32, #tpu.memory_space<vmem>>, vector<128x4xf32>
      tpu.vector_store %arg7[%c0_19, %c0_20], %65 {strides = array<i32>} : memref<128x4xf32, #tpu.memory_space<vmem>>, vector<128x4xf32>,
    } else {
    }
    %c32_i32 = arith.constant 32 : i32
    %3 = arith.muli %arg1, %c32_i32 : i32
    %4 = tpu.iota {dimensions = array<i32: 0>} : vector<32x4xi32>
    %5 = vector.broadcast %3 : i32 to vector<32x4xi32>
    %6 = arith.addi %5, %4 : vector<32x4xi32>
    %cst = arith.constant 0.000000e+00 : f32
    %7 = vector.broadcast %cst : f32 to vector<32x4xf32>
    %c0 = arith.constant 0 : index
    %c0_1 = arith.constant 0 : index
    %8 = vector.load %arg2[%c0, %c0_1] : memref<8x4xi32, #tpu.memory_space<vmem>>, vector<1x4xi32>
    %9 = vector.broadcast %8 : vector<1x4xi32> to vector<32x4xi32>
    %10 = arith.cmpi eq, %9, %6 : vector<32x4xi32>
    %11 = arith.extui %10 : vector<32x4xi1> to vector<32x4xi32>
    %12 = arith.sitofp %11 : vector<32x4xi32> to vector<32x4xf32>
    %13 = arith.addf %7, %12 : vector<32x4xf32>
    %c1 = arith.constant 1 : index
    %c0_2 = arith.constant 0 : index
    %14 = vector.load %arg2[%c1, %c0_2] : memref<8x4xi32, #tpu.memory_space<vmem>>, vector<1x4xi32>
    %15 = vector.broadcast %14 : vector<1x4xi32> to vector<32x4xi32>
    %16 = arith.cmpi eq, %15, %6 : vector<32x4xi32>
    %17 = arith.extui %16 : vector<32x4xi1> to vector<32x4xi32>
    %18 = arith.sitofp %17 : vector<32x4xi32> to vector<32x4xf32>
    %19 = arith.addf %13, %18 : vector<32x4xf32>
    %c2 = arith.constant 2 : index
    %c0_3 = arith.constant 0 : index
    %20 = vector.load %arg2[%c2, %c0_3] : memref<8x4xi32, #tpu.memory_space<vmem>>, vector<1x4xi32>
    %21 = vector.broadcast %20 : vector<1x4xi32> to vector<32x4xi32>
    %22 = arith.cmpi eq, %21, %6 : vector<32x4xi32>
    %23 = arith.extui %22 : vector<32x4xi1> to vector<32x4xi32>
    %24 = arith.sitofp %23 : vector<32x4xi32> to vector<32x4xf32>
    %25 = arith.addf %19, %24 : vector<32x4xf32>
    %c3 = arith.constant 3 : index
    %c0_4 = arith.constant 0 : index
    %26 = vector.load %arg2[%c3, %c0_4] : memref<8x4xi32, #tpu.memory_space<vmem>>, vector<1x4xi32>
    %27 = vector.broadcast %26 : vector<1x4xi32> to vector<32x4xi32>
    %28 = arith.cmpi eq, %27, %6 : vector<32x4xi32>
    %29 = arith.extui %28 : vector<32x4xi1> to vector<32x4xi32>
    %30 = arith.sitofp %29 : vector<32x4xi32> to vector<32x4xf32>
    %31 = arith.addf %25, %30 : vector<32x4xf32>
    %c4 = arith.constant 4 : index
    %c0_5 = arith.constant 0 : index
    %32 = vector.load %arg2[%c4, %c0_5] : memref<8x4xi32, #tpu.memory_space<vmem>>, vector<1x4xi32>
    %33 = vector.broadcast %32 : vector<1x4xi32> to vector<32x4xi32>
    %34 = arith.cmpi eq, %33, %6 : vector<32x4xi32>
    %35 = arith.extui %34 : vector<32x4xi1> to vector<32x4xi32>
    %36 = arith.sitofp %35 : vector<32x4xi32> to vector<32x4xf32>
    %37 = arith.addf %31, %36 : vector<32x4xf32>
    %c5 = arith.constant 5 : index
    %c0_6 = arith.constant 0 : index
    %38 = vector.load %arg2[%c5, %c0_6] : memref<8x4xi32, #tpu.memory_space<vmem>>, vector<1x4xi32>
    %39 = vector.broadcast %38 : vector<1x4xi32> to vector<32x4xi32>
    %40 = arith.cmpi eq, %39, %6 : vector<32x4xi32>
    %41 = arith.extui %40 : vector<32x4xi1> to vector<32x4xi32>
    %42 = arith.sitofp %41 : vector<32x4xi32> to vector<32x4xf32>
    %43 = arith.addf %37, %42 : vector<32x4xf32>
    %c6 = arith.constant 6 : index
    %c0_7 = arith.constant 0 : index
    %44 = vector.load %arg2[%c6, %c0_7] : memref<8x4xi32, #tpu.memory_space<vmem>>, vector<1x4xi32>
    %45 = vector.broadcast %44 : vector<1x4xi32> to vector<32x4xi32>
    %46 = arith.cmpi eq, %45, %6 : vector<32x4xi32>
    %47 = arith.extui %46 : vector<32x4xi1> to vector<32x4xi32>
    %48 = arith.sitofp %47 : vector<32x4xi32> to vector<32x4xf32>
    %49 = arith.addf %43, %48 : vector<32x4xf32>
    %c7 = arith.constant 7 : index
    %c0_8 = arith.constant 0 : index
    %50 = vector.load %arg2[%c7, %c0_8] : memref<8x4xi32, #tpu.memory_space<vmem>>, vector<1x4xi32>
    %51 = vector.broadcast %50 : vector<1x4xi32> to vector<32x4xi32>
    %52 = arith.cmpi eq, %51, %6 : vector<32x4xi32>
    %53 = arith.extui %52 : vector<32x4xi1> to vector<32x4xi32>
    %54 = arith.sitofp %53 : vector<32x4xi32> to vector<32x4xf32>
    %55 = arith.addf %49, %54 : vector<32x4xf32>
    %c0_9 = arith.constant 0 : index
    %c0_10 = arith.constant 0 : index
    %56 = vector.load %arg7[%c0_9, %c0_10] : memref<128x4xf32, #tpu.memory_space<vmem>>, vector<128x4xf32>
    %c0_11 = arith.constant 0 : index
    %c0_12 = arith.constant 0 : index
    %57 = vector.load %arg3[%c0_11, %c0_12] : memref<128x32xbf16, #tpu.memory_space<vmem>>, vector<128x32xbf16>
    %58 = arith.extf %57 : vector<128x32xbf16> to vector<128x32xf32>
    %cst_13 = arith.constant dense<0.000000e+00> : vector<128x4xf32>
    %59 = tpu.matmul %58, %55, %cst_13 {dimension_numbers = #tpu.dot_dimension_numbers<[1], [0], [0], [1], [0, 0, 1, 1], [], []>} : vector<128x32xf32>, vector<32x4xf32>, vector<128x4xf32> -> vector<128x4xf32>
    %60 = arith.addf %56, %59 : vector<128x4xf32>
    %c0_14 = arith.constant 0 : index
    %c0_15 = arith.constant 0 : index
    %61 = vector.load %arg7[%c0_14, %c0_15] : memref<128x4xf32, #tpu.memory_space<vmem>>, vector<128x4xf32>
    tpu.vector_store %arg7[%c0_14, %c0_15], %60 {strides = array<i32>} : memref<128x4xf32, #tpu.memory_space<vmem>>, vector<128x4xf32>,
    %c0_i32_16 = arith.constant 0 : i32
    %62 = arith.cmpi eq, %arg1, %c0_i32_16 : i32
    %63 = arith.extui %62 : i1 to i32
    %c0_i32_17 = arith.constant 0 : i32
    %64 = arith.cmpi ne, %63, %c0_i32_17 : i32
    scf.if %64 {
      %c0_18 = arith.constant 0 : index
      %c0_19 = arith.constant 0 : index
      %65 = vector.load %arg4[%c0_18, %c0_19] : memref<1x128xf32, #tpu.memory_space<vmem>>, vector<1x128xf32>
      %c0_20 = arith.constant 0 : index
      %c0_21 = arith.constant 0 : index
      %66 = vector.load %arg7[%c0_20, %c0_21] : memref<128x4xf32, #tpu.memory_space<vmem>>, vector<128x4xf32>
      %cst_22 = arith.constant dense<0.000000e+00> : vector<1x4xf32>
      %67 = tpu.matmul %65, %66, %cst_22 {dimension_numbers = #tpu.dot_dimension_numbers<[1], [0], [0], [1], [0, 0, 1, 1], [], []>} : vector<1x128xf32>, vector<128x4xf32>, vector<1x4xf32> -> vector<1x4xf32>
      %c0_23 = arith.constant 0 : index
      %c0_24 = arith.constant 0 : index
      %68 = vector.load %arg5[%c0_23, %c0_24] : memref<1x1xf32, #tpu.memory_space<vmem>>, vector<1x1xf32>
      %69 = vector.broadcast %68 : vector<1x1xf32> to vector<1x4xf32>
      %70 = arith.addf %67, %69 : vector<1x4xf32>
      %cst_25 = arith.constant 0.000000e+00 : f32
      %71 = vector.broadcast %cst_25 : f32 to vector<1x4xf32>
      %72 = arith.subf %71, %70 : vector<1x4xf32>
      %73 = math.exp %72 : vector<1x4xf32>
      %cst_26 = arith.constant 1.000000e+00 : f32
      %74 = vector.broadcast %cst_26 : f32 to vector<1x4xf32>
      %75 = arith.addf %74, %73 : vector<1x4xf32>
      %cst_27 = arith.constant 1.000000e+00 : f32
      %76 = vector.broadcast %cst_27 : f32 to vector<1x4xf32>
      %77 = arith.divf %76, %75 : vector<1x4xf32>
      %c0_28 = arith.constant 0 : index
      %c0_29 = arith.constant 0 : index
      %78 = vector.load %arg6[%c0_28, %c0_29] : memref<1x4xf32, #tpu.memory_space<vmem>>, vector<1x4xf32>
      tpu.vector_store %arg6[%c0_28, %c0_29], %77 {strides = array<i32>} : memref<1x4xf32, #tpu.memory_space<vmem>>, vector<1x4xf32>,
    } else {
    }
    return
  }
  func.func @transform_0(%arg0: i32, %arg1: i32) -> (i32, i32) {
    %c0_i32 = arith.constant 0 : i32
    %c0_i32_0 = arith.constant 0 : i32
    return %c0_i32, %arg0 : i32, i32
  }
  func.func @transform_1(%arg0: i32, %arg1: i32) -> (i32, i32) {
    %c0_i32 = arith.constant 0 : i32
    %c0_i32_0 = arith.constant 0 : i32
    return %c0_i32, %arg1 : i32, i32
  }
  func.func @transform_2(%arg0: i32, %arg1: i32) -> (i32, i32) {
    %c0_i32 = arith.constant 0 : i32
    %c0_i32_0 = arith.constant 0 : i32
    %c0_i32_1 = arith.constant 0 : i32
    return %c0_i32, %c0_i32_0 : i32, i32
  }
  func.func @transform_3(%arg0: i32, %arg1: i32) -> (i32, i32) {
    %c0_i32 = arith.constant 0 : i32
    %c0_i32_0 = arith.constant 0 : i32
    %c0_i32_1 = arith.constant 0 : i32
    return %c0_i32, %c0_i32_0 : i32, i32
  }
  func.func @transform_4(%arg0: i32, %arg1: i32) -> (i32, i32) {
    %c0_i32 = arith.constant 0 : i32
    %c0_i32_0 = arith.constant 0 : i32
    return %c0_i32, %arg0 : i32, i32
  }
}

</mosaic_0001>

<bundles_post_ra>
// kernel: tpu_custom_call.1
= control target key start
LH: loop header
LB: loop body
LE: loop exit
PB: predicated region body
PF: predicated region fallthrough
CT: control target
= control target key end

     0   :  { %s1168_s0 = inlined_call_operand.vmem [shape: s32[8,4], index: 0, kind: input, shape index: {}]   ;;  %s1169_s1 = inlined_call_operand.vmem [shape: bf16[128,32], index: 1, kind: input, shape index: {}]   ;;  %s1170_s2 = inlined_call_operand.vmem [shape: f32[1,128], index: 2, kind: input, shape index: {}]   ;;  %s1171_s3 = inlined_call_operand.<no memory space> [shape: f32[1,1], index: 3, kind: input, shape index: {}]   ;;  %s1172_s4 = inlined_call_operand.hbm [shape: f32[1,4], index: 4, kind: output, shape index: {}]  }
   0x1   :  { %v9_v0 = vstv %s1171_s3 }
   0x2   :  { %10 = vst [vmem:[#allocation3] sm:$0x1] %v9_v0 }
   0x3   :  { %v42_v1 = vlaneseq  ;;  %v918_v2 = vld [vmem:[%s1169_s1] sm:$0xff]   ;;  %vm268_vm0 = vcmask 261120   ;;  %vm24_vm1 = vcmask 31744   ;;  %v882_v10 = vmov 0.0  }
   0x4   :  { %v923_v3 = vld [vmem:[%s1168_s0] ss:$0 sm:$0xff]  ;;  %v928_v4 = vld [vmem:[%s1168_s0 + $0x1] ss:$0 sm:$0xff]  ;;  %v933_v5 = vld [vmem:[%s1168_s0 + $0x2] ss:$0 sm:$0xff]  ;;  %v675_v6 = vunpack.c.l.bf16 %v918_v2 }
   0x5   :  { %v936_v7 = vshrl.u32 %v42_v1, 7  ;;  %v941_v8 = vld [vmem:[%s1168_s0 + $0x3] ss:$0 sm:$0xff]  ;;  %26 = vst.msk [vmem:[#allocation2 + $0x8] sm:$0xff] %vm24_vm1, %v882_v10  ;;  %25 = vst.msk [vmem:[#allocation2] sm:$0xff] %vm24_vm1, %v882_v10 }
   0x6   :  { %757 = vmatprep.mubr.msk.f32.mxu0 %vm268_vm0, %v675_v6  ;;  %27 = vst.msk [vmem:[#allocation2 + $0x10] sm:$0xff] %vm24_vm1, %v882_v10  ;;  %28 = vst.msk [vmem:[#allocation2 + $0x18] sm:$0xff] %vm24_vm1, %v882_v10  ;;  %v1008_v15 = vld [vmem:[%s1168_s0 + $0x4] ss:$0 sm:$0xff]  ;;  %v1013_v16 = vld [vmem:[%s1168_s0 + $0x5] ss:$0 sm:$0xff] }
   0x7   :  { %v945_v9 = vadd.s32 8, %v936_v7  ;;  %vm57_vm2 = vcmp.eq.s32.totalorder %v923_v3, %v936_v7  ;;  %vm78_vm3 = vcmp.eq.s32.totalorder %v928_v4, %v936_v7  ;;  %vm99_vm4 = vcmp.eq.s32.totalorder %v933_v5, %v936_v7  ;;  %29 = vst.msk [vmem:[#allocation2 + $0x20] sm:$0xff] %vm24_vm1, %v882_v10  ;;  %30 = vst.msk [vmem:[#allocation2 + $0x28] sm:$0xff] %vm24_vm1, %v882_v10 }
   0x8   :  { %31 = vst.msk [vmem:[#allocation2 + $0x30] sm:$0xff] %vm24_vm1, %v882_v10  ;;  %32 = vst.msk [vmem:[#allocation2 + $0x38] sm:$0xff] %vm24_vm1, %v882_v10  ;;  %v618_v11 = vsel %vm57_vm2, 1.0, %v882_v10  ;;  %v623_v12 = vsel %vm78_vm3, 1.0, %v882_v10  ;;  %v628_v13 = vsel %vm99_vm4, 1.0, %v882_v10  ;;  %vm120_vm5 = vcmp.eq.s32.totalorder %v941_v8, %v936_v7 }
   0x9   :  { %33 = vst.msk [vmem:[#allocation2 + $0x40] sm:$0xff] %vm24_vm1, %v882_v10  ;;  %34 = vst.msk [vmem:[#allocation2 + $0x48] sm:$0xff] %vm24_vm1, %v882_v10  ;;  %vm58_vm6 = vcmp.eq.s32.totalorder %v923_v3, %v945_v9  ;;  %vm79_vm7 = vcmp.eq.s32.totalorder %v928_v4, %v945_v9  ;;  %v90_v14 = vadd.f32 %v623_v12, %v618_v11 }
   0xa   :  { %35 = vst.msk [vmem:[#allocation2 + $0x50] sm:$0xff] %vm24_vm1, %v882_v10  ;;  %36 = vst.msk [vmem:[#allocation2 + $0x58] sm:$0xff] %vm24_vm1, %v882_v10  ;;  %vm100_vm8 = vcmp.eq.s32.totalorder %v933_v5, %v945_v9 }
   0xb   :  { %37 = vst.msk [vmem:[#allocation2 + $0x60] sm:$0xff] %vm24_vm1, %v882_v10  ;;  %38 = vst.msk [vmem:[#allocation2 + $0x68] sm:$0xff] %vm24_vm1, %v882_v10 }
   0xc   :  { %39 = vst.msk [vmem:[#allocation2 + $0x70] sm:$0xff] %vm24_vm1, %v882_v10  ;;  %40 = vst.msk [vmem:[#allocation2 + $0x78] sm:$0xff] %vm24_vm1, %v882_v10 }
   0xd   :  { %11 = vsyncpa [#allocation5], 0  ;;  %v619_v17 = vsel %vm58_vm6, 1.0, %v882_v10  ;;  %v624_v18 = vsel %vm79_vm7, 1.0, %v882_v10  ;;  %v629_v19 = vsel %vm100_vm8, 1.0, %v882_v10  ;;  %vm121_vm9 = vcmp.eq.s32.totalorder %v941_v8, %v945_v9  ;;  %s886_s22 = smov [#allocation4]  }
   0xe   :  { %v91_v20 = vadd.f32 %v624_v18, %v619_v17  ;;  %v111_v21 = vadd.f32 %v628_v13, %v90_v14  ;;  %v633_v22 = vsel %vm120_vm5, 1.0, %v882_v10  ;;  %v634_v23 = vsel %vm121_vm9, 1.0, %v882_v10  ;;  %v1025_v24 = vld [vmem:[%s1168_s0 + $0x6] ss:$0 sm:$0xff]  ;;  %v1040_v29 = vld [vmem:[%s1168_s0 + $0x7] ss:$0 sm:$0xff] }
   0xf   :  { %vm141_vm10 = vcmp.eq.s32.totalorder %v1008_v15, %v936_v7  ;;  %vm142_vm11 = vcmp.eq.s32.totalorder %v1008_v15, %v945_v9  ;;  %vm162_vm12 = vcmp.eq.s32.totalorder %v1013_v16, %v936_v7  ;;  %vm163_vm13 = vcmp.eq.s32.totalorder %v1013_v16, %v945_v9  ;;  %v705_v18 = vld [vmem:[%s1169_s1 + $0x8] sm:$0xff]   ;;  %s609_s23 = sshll.u32 %s886_s22, 4  ;;  %s610_s23 = int_to_ptr.vmem [resolvable:$true] %s609_s23 }
  0x10   :  { %v112_v25 = vadd.f32 %v629_v19, %v91_v20  ;;  %v132_v26 = vadd.f32 %v633_v22, %v111_v21  ;;  %v638_v27 = vsel %vm141_vm10, 1.0, %v882_v10  ;;  %v639_v28 = vsel %vm142_vm11, 1.0, %v882_v10  ;;  %v706_v21 = vld [vmem:[%s1169_s1 + $0x10] sm:$0xff]   ;;  %s862_s24 = scalar_lea.vmem %s610_s23, 32  ;;  %p863_p1 = scmp.lt.s32.totalorder %s610_s23, %s610_s23 }
  0x11   :  { %v643_v30 = vsel %vm162_vm12, 1.0, %v882_v10  ;;  %v644_v31 = vsel %vm163_vm13, 1.0, %v882_v10  ;;  %vm183_vm14 = vcmp.eq.s32.totalorder %v1025_v24, %v936_v7  ;;  %vm184_vm15 = vcmp.eq.s32.totalorder %v1025_v24, %v945_v9 }
  0x12   :  { %v133_v32 = vadd.f32 %v634_v23, %v112_v25  ;;  %v153_v33 = vadd.f32 %v638_v27, %v132_v26  ;;  %v648_v34 = vsel %vm183_vm14, 1.0, %v882_v10  ;;  %v649_v35 = vsel %vm184_vm15, 1.0, %v882_v10  ;;  %v708_v26 = vld [vmem:[%s1169_s1 + $0x20] sm:$0xff]  }
  0x13   :  { %vm204_vm2 = vcmp.eq.s32.totalorder %v1040_v29, %v936_v7  ;;  %vm205_vm3 = vcmp.eq.s32.totalorder %v1040_v29, %v945_v9  ;;  %v45_v36 = vadd.s32 16, %v936_v7  ;;  %v46_v37 = vadd.s32 24, %v936_v7 }
  0x14   :  { %v154_v38 = vadd.f32 %v639_v28, %v133_v32  ;;  %v174_v39 = vadd.f32 %v643_v30, %v153_v33  ;;  %v653_v40 = vsel %vm204_vm2, 1.0, %v882_v10  ;;  %v654_v41 = vsel %vm205_vm3, 1.0, %v882_v10  ;;  %v710_v32 = vld [vmem:[%s1169_s1 + $0x30] sm:$0xff]  }
  0x15   :  { %vm59_vm4 = vcmp.eq.s32.totalorder %v923_v3, %v45_v36  ;;  %vm60_vm5 = vcmp.eq.s32.totalorder %v923_v3, %v46_v37  ;;  %vm80_vm6 = vcmp.eq.s32.totalorder %v928_v4, %v45_v36  ;;  %vm81_vm7 = vcmp.eq.s32.totalorder %v928_v4, %v46_v37 }
  0x16   :  { %v175_v42 = vadd.f32 %v644_v31, %v154_v38  ;;  %v195_v43 = vadd.f32 %v648_v34, %v174_v39  ;;  %v620_v44 = vsel %vm59_vm4, 1.0, %v882_v10  ;;  %v621_v45 = vsel %vm60_vm5, 1.0, %v882_v10 }
  0x17   :  { %v625_v46 = vsel %vm80_vm6, 1.0, %v882_v10  ;;  %v626_v47 = vsel %vm81_vm7, 1.0, %v882_v10  ;;  %vm101_vm8 = vcmp.eq.s32.totalorder %v933_v5, %v45_v36  ;;  %vm102_vm9 = vcmp.eq.s32.totalorder %v933_v5, %v46_v37 }
  0x18   :  { %v196_v48 = vadd.f32 %v649_v35, %v175_v42  ;;  %v216_v49 = vadd.f32 %v653_v40, %v195_v43  ;;  %v92_v50 = vadd.f32 %v625_v46, %v620_v44  ;;  %v93_v51 = vadd.f32 %v626_v47, %v621_v45  ;;  %v711_v35 = vld [vmem:[%s1169_s1 + $0x38] sm:$0xff]   ;;  %v515_v40 = vld [vmem:[#allocation3] sm:$0x1]  ;;  %v221_v42 = vld [vmem:[#allocation2 + $0x8] sm:$0xff] }
  0x19   :  { %v630_v52 = vsel %vm101_vm8, 1.0, %v882_v10  ;;  %v631_v53 = vsel %vm102_vm9, 1.0, %v882_v10  ;;  %vm122_vm10 = vcmp.eq.s32.totalorder %v941_v8, %v45_v36  ;;  %vm123_vm11 = vcmp.eq.s32.totalorder %v941_v8, %v46_v37  ;;  %v220_v43 = vld [vmem:[#allocation2] sm:$0xff] }
  0x1a   :  { %v217_v54 = vadd.f32 %v654_v41, %v196_v48  ;;  %v113_v55 = vadd.f32 %v630_v52, %v92_v50  ;;  %v114_v56 = vadd.f32 %v631_v53, %v93_v51  ;;  %v635_v57 = vsel %vm122_vm10, 1.0, %v882_v10  ;;  %v223_v48 = vld [vmem:[#allocation2 + $0x18] sm:$0xff]  ;;  %v225_v53 = vld [vmem:[#allocation2 + $0x28] sm:$0xff] }
  0x1b   :  { %v636_v58 = vsel %vm123_vm11, 1.0, %v882_v10  ;;  %vm143_vm12 = vcmp.eq.s32.totalorder %v1008_v15, %v45_v36  ;;  %vm144_vm13 = vcmp.eq.s32.totalorder %v1008_v15, %v46_v37  ;;  %vm164_vm14 = vcmp.eq.s32.totalorder %v1013_v16, %v45_v36 }
  0x1c   :  { %v816_v59 = vpack.c.bf16 %v217_v54, %v216_v49  ;;  %v134_v60 = vadd.f32 %v635_v57, %v113_v55  ;;  %v135_v61 = vadd.f32 %v636_v58, %v114_v56  ;;  %v640_v62 = vsel %vm143_vm12, 1.0, %v882_v10  ;;  %v222_v49 = vld [vmem:[#allocation2 + $0x10] sm:$0xff]  ;;  %v224_v54 = vld [vmem:[#allocation2 + $0x20] sm:$0xff] }
  0x1d   :  { %v641_v63 = vsel %vm144_vm13, 1.0, %v882_v10  ;;  %vm165_vm15 = vcmp.eq.s32.totalorder %v1013_v16, %v46_v37  ;;  %v645_v0 = vsel %vm164_vm14, 1.0, %v882_v10  ;;  %vm185_vm2 = vcmp.eq.s32.totalorder %v1025_v24, %v45_v36 }
  0x1e   :  { %817 = vmatprep.subr.bf16.mxu0 %v816_v59  ;;  %v155_v1 = vadd.f32 %v640_v62, %v134_v60  ;;  %v156_v3 = vadd.f32 %v641_v63, %v135_v61  ;;  %v646_v4 = vsel %vm165_vm15, 1.0, %v882_v10  ;;  %vm186_vm3 = vcmp.eq.s32.totalorder %v1025_v24, %v46_v37  ;;  %v707_v24 = vld [vmem:[%s1169_s1 + $0x18] sm:$0xff]   ;;  %v226_v61 = vld [vmem:[#allocation2 + $0x30] sm:$0xff] }
  0x1f   :  { %819 = vmatpush3.bf16.msra.mxu0 %v816_v59  ;;  %v650_v5 = vsel %vm185_vm2, 1.0, %v882_v10  ;;  %v651_v6 = vsel %vm186_vm3, 1.0, %v882_v10  ;;  %vm206_vm4 = vcmp.eq.s32.totalorder %v1040_v29, %v45_v36  ;;  %vm207_vm5 = vcmp.eq.s32.totalorder %v1040_v29, %v46_v37  ;;  %v709_v29 = vld [vmem:[%s1169_s1 + $0x28] sm:$0xff]   ;;  %v227_v59 = vld [vmem:[#allocation2 + $0x38] sm:$0xff] }
  0x20   :  { %v176_v8 = vadd.f32 %v645_v0, %v155_v1  ;;  %v177_v9 = vadd.f32 %v646_v4, %v156_v3  ;;  %v655_v11 = vsel %vm206_vm4, 1.0, %v882_v10  ;;  %v656_v12 = vsel %vm207_vm5, 1.0, %v882_v10 }
  0x21   :  { %v676_v19 = vunpack.c.h.bf16 %v918_v2  ;;  %v679_v20 = vunpack.c.l.bf16 %v705_v18  ;;  %v680_v22 = vunpack.c.h.bf16 %v705_v18  ;;  %v683_v23 = vunpack.c.l.bf16 %v706_v21  ;;  %v230_v18 = vld [vmem:[#allocation2 + $0x50] sm:$0xff] }
  0x22   :  { %v197_v13 = vadd.f32 %v650_v5, %v176_v8  ;;  %v198_v14 = vadd.f32 %v651_v6, %v177_v9  ;;  %v684_v25 = vunpack.c.h.bf16 %v706_v21  ;;  %v687_v2 = vunpack.c.l.bf16 %v707_v24  ;;  %v229_v5 = vld [vmem:[#allocation2 + $0x48] sm:$0xff]  ;;  %v228_v8 = vld [vmem:[#allocation2 + $0x40] sm:$0xff] }
  0x23   :  { %v688_v27 = vunpack.c.h.bf16 %v707_v24  ;;  %v691_v28 = vunpack.c.l.bf16 %v708_v26  ;;  %v692_v30 = vunpack.c.h.bf16 %v708_v26  ;;  %v695_v31 = vunpack.c.l.bf16 %v709_v29  ;;  %v232_v26 = vld [vmem:[#allocation2 + $0x60] sm:$0xff] }
  0x24   :  { %v218_v15 = vadd.f32 %v655_v11, %v197_v13  ;;  %v219_v16 = vadd.f32 %v656_v12, %v198_v14  ;;  %v696_v33 = vunpack.c.h.bf16 %v709_v29  ;;  %v699_v34 = vunpack.c.l.bf16 %v710_v32 }
  0x25   :  { %v700_v36 = vunpack.c.h.bf16 %v710_v32  ;;  %v703_v37 = vunpack.c.l.bf16 %v711_v35  ;;  %v704_v38 = vunpack.c.h.bf16 %v711_v35  ;;  %v883_v39 = vmov 0.0|0.0   ;;  %v234_v35 = vld [vmem:[#allocation2 + $0x70] sm:$0xff] }
  0x26   :  { %v820_v17 = vpack.c.bf16 %v219_v16, %v218_v15  ;;  %824 = vmatprep.subr.bf16.mxu1 %v883_v39  ;;  %vm884_vm6 = vmmov 0   ;;  %v885_v41 = vmov 0   ;;  %v231_v16 = vld [vmem:[#allocation2 + $0x58] sm:$0xff] }
  0x27   :  { %813 = vmatprep.mubr.msk.f32.mxu1 %vm884_vm6, %v882_v10  ;;  %853 = vset.pattern.permute.xlu0 %v885_v41 }
  0x28   :  { %821 = vmatprep.subr.bf16.mxu0 %v820_v17  ;;  %518 = vperm.xlu0 %853, %v515_v40  }
  0x29   :  { %823 = vmatpush3.bf16.msra.mxu0 %v820_v17 }
  0x2c   :  { %758 = vmatmul.mubr.msk.f32.vlgmr.msra.gmra.mrb[0].mxu0 %vm268_vm0, %v676_v19 }
  0x2d   :  { %760 = vmatprep.mubr.msk.f32.mxu0 %vm268_vm0, %v679_v20 }
  0x30   :  { %761 = vmatmul.mubr.msk.f32.gmra.mrb[2].mxu0 %vm268_vm0, %v680_v22 }
  0x31   :  { %763 = vmatprep.mubr.msk.f32.mxu0 %vm268_vm0, %v683_v23 }
  0x34   :  { %764 = vmatmul.mubr.msk.f32.gmra.mrb[4].mxu0 %vm268_vm0, %v684_v25  ;;  %v233_v25 = vld [vmem:[#allocation2 + $0x68] sm:$0xff] }
  0x35   :  { %766 = vmatprep.mubr.msk.f32.mxu0 %vm268_vm0, %v687_v2 }
  0x38   :  { %767 = vmatmul.mubr.msk.f32.gmra.mrb[6].mxu0 %vm268_vm0, %v688_v27 }
  0x39   :  { %769 = vmatprep.mubr.msk.f32.mxu0 %vm268_vm0, %v691_v28 }
  0x3c   :  { %770 = vmatmul.mubr.msk.f32.gmra.mrb[8].mxu0 %vm268_vm0, %v692_v30 }
  0x3d   :  { %772 = vmatprep.mubr.msk.f32.mxu0 %vm268_vm0, %v695_v31 }
  0x40   :  { %773 = vmatmul.mubr.msk.f32.gmra.mrb[10].mxu0 %vm268_vm0, %v696_v33  ;;  %v235_v33 = vld [vmem:[#allocation2 + $0x78] sm:$0xff] }
  0x41   :  { %775 = vmatprep.mubr.msk.f32.mxu0 %vm268_vm0, %v699_v34 }
  0x44   :  { %776 = vmatmul.mubr.msk.f32.gmra.mrb[12].mxu0 %vm268_vm0, %v700_v36 }
  0x45   :  { %778 = vmatprep.mubr.msk.f32.mxu0 %vm268_vm0, %v703_v37 }
  0x48   :  { %779 = vmatmul.mubr.msk.f32.gmra.mrb[14].mxu0 %vm268_vm0, %v704_v38  ;;  %vm601_vm0 = vcmask 24576  }
  0xff   :  { %v759_v44 = vpop.f32.mrb[0].mxu0 }
 0x100   :  { %v463_v45 = vadd.f32 %v759_v44, %v221_v42  ;;  %v383_v46 = vpop.f32.mrb[1].mxu0 }
 0x101   :  { %v462_v47 = vadd.f32 %v383_v46, %v220_v43 }
 0x102   :  { %480 = vst.msk [vmem:[#allocation2 + $0x8] sm:$0xff] %vm24_vm1, %v463_v45 }
 0x103   :  { %479 = vst.msk [vmem:[#allocation2] sm:$0xff] %vm24_vm1, %v462_v47  ;;  %v762_v50 = vpop.f32.mrb[2].mxu0 }
 0x104   :  { %v465_v51 = vadd.f32 %v762_v50, %v223_v48  ;;  %v393_v52 = vpop.f32.mrb[3].mxu0 }
 0x105   :  { %v464_v10 = vadd.f32 %v393_v52, %v222_v49  ;;  %v498_v52 = vld [vmem:[%s1170_s2] sm:$0x1]  ;;  %s858_s2 = scalar_lea.vmem %s610_s23, 16 }
 0x106   :  { %482 = vst.msk [vmem:[#allocation2 + $0x18] sm:$0xff] %vm24_vm1, %v465_v51  ;;  %p859_p0 = scmp.ne.s32.totalorder %s610_s23, %s858_s2  ;;  %p864_p2 = scmp.lt.s32.totalorder %s862_s24, %s858_s2 }
 0x107   :  { %481 = vst.msk [vmem:[#allocation2 + $0x10] sm:$0xff] %vm24_vm1, %v464_v10  ;;  %v765_v55 = vpop.f32.mrb[4].mxu0  ;;  %v523_v10 = vsub.s32 0, %v936_v7 }
 0x108   :  { %v467_v56 = vadd.f32 %v765_v55, %v225_v53  ;;  %v403_v57 = vpop.f32.mrb[5].mxu0  ;;  %v519_v53 = vpop.permute.xlu0 %518  ;;  %p865_p3 = por %p864_p2, %p863_p1 }
 0x109   :  { %v466_v58 = vadd.f32 %v403_v57, %v224_v54  ;;  %v500_v60 = vld [vmem:[#allocation2 + $0x8] sm:$0xff]  ;;  %v524_v54 = vrot.slane %v519_v53, %v523_v10 }
 0x10a   :  { %484 = vst.msk [vmem:[#allocation2 + $0x28] sm:$0xff] %vm24_vm1, %v467_v56  ;;  %v499_v62 = vld [vmem:[#allocation2] sm:$0xff]  ;;  %p866_p4 = pnand %p865_p3, %p859_p0 }
 0x10b   :  { %483 = vst.msk [vmem:[#allocation2 + $0x20] sm:$0xff] %vm24_vm1, %v466_v58  ;;  %v768_v63 = vpop.f32.mrb[6].mxu0  ;;  %v825_v0 = vpack.c.bf16 %v500_v60, %v499_v62 }
 0x10c   :  { %v469_v1 = vadd.f32 %v768_v63, %v227_v59  ;;  %v413_v3 = vpop.f32.mrb[7].mxu0 }
 0x10d   :  { %v468_v4 = vadd.f32 %v413_v3, %v226_v61  ;;  %826 = vmatpush3.bf16.msra.mxu1 %v825_v0  ;;  %v502_v6 = vld [vmem:[#allocation2 + $0x18] sm:$0xff] }
 0x10e   :  { %486 = vst.msk [vmem:[#allocation2 + $0x38] sm:$0xff] %vm24_vm1, %v469_v1  ;;  %827 = vmatprep.subr.bf16.mxu1 %v883_v39  ;;  %v501_v9 = vld [vmem:[#allocation2 + $0x10] sm:$0xff] }
 0x10f   :  { %485 = vst.msk [vmem:[#allocation2 + $0x30] sm:$0xff] %vm24_vm1, %v468_v4  ;;  %v771_v11 = vpop.f32.mrb[8].mxu0  ;;  %v828_v12 = vpack.c.bf16 %v502_v6, %v501_v9 }
 0x110   :  { %v471_v13 = vadd.f32 %v771_v11, %v229_v5  ;;  %v423_v14 = vpop.f32.mrb[9].mxu0 }
 0x111   :  { %v470_v15 = vadd.f32 %v423_v14, %v228_v8  ;;  %829 = vmatpush3.bf16.msra.mxu1 %v828_v12  ;;  %v504_v17 = vld [vmem:[#allocation2 + $0x28] sm:$0xff] }
 0x112   :  { %488 = vst.msk [vmem:[#allocation2 + $0x48] sm:$0xff] %vm24_vm1, %v471_v13  ;;  %830 = vmatprep.subr.bf16.mxu1 %v883_v39  ;;  %v503_v19 = vld [vmem:[#allocation2 + $0x20] sm:$0xff] }
 0x113   :  { %487 = vst.msk [vmem:[#allocation2 + $0x40] sm:$0xff] %vm24_vm1, %v470_v15  ;;  %v774_v20 = vpop.f32.mrb[10].mxu0  ;;  %v831_v21 = vpack.c.bf16 %v504_v17, %v503_v19 }
 0x114   :  { %v473_v22 = vadd.f32 %v774_v20, %v231_v16  ;;  %v433_v23 = vpop.f32.mrb[11].mxu0 }
 0x115   :  { %v472_v24 = vadd.f32 %v433_v23, %v230_v18  ;;  %832 = vmatpush3.bf16.msra.mxu1 %v831_v21  ;;  %v506_v2 = vld [vmem:[#allocation2 + $0x38] sm:$0xff] }
 0x116   :  { %490 = vst.msk [vmem:[#allocation2 + $0x58] sm:$0xff] %vm24_vm1, %v473_v22  ;;  %833 = vmatprep.subr.bf16.mxu1 %v883_v39  ;;  %v505_v27 = vld [vmem:[#allocation2 + $0x30] sm:$0xff] }
 0x117   :  { %489 = vst.msk [vmem:[#allocation2 + $0x50] sm:$0xff] %vm24_vm1, %v472_v24  ;;  %v777_v28 = vpop.f32.mrb[12].mxu0  ;;  %v834_v29 = vpack.c.bf16 %v506_v2, %v505_v27 }
 0x118   :  { %v475_v30 = vadd.f32 %v777_v28, %v233_v25  ;;  %v443_v31 = vpop.f32.mrb[13].mxu0 }
 0x119   :  { %v474_v32 = vadd.f32 %v443_v31, %v232_v26  ;;  %835 = vmatpush3.bf16.msra.mxu1 %v834_v29  ;;  %v508_v34 = vld [vmem:[#allocation2 + $0x48] sm:$0xff] }
 0x11a   :  { %492 = vst.msk [vmem:[#allocation2 + $0x68] sm:$0xff] %vm24_vm1, %v475_v30  ;;  %836 = vmatprep.subr.bf16.mxu1 %v883_v39  ;;  %v507_v36 = vld [vmem:[#allocation2 + $0x40] sm:$0xff] }
 0x11b   :  { %491 = vst.msk [vmem:[#allocation2 + $0x60] sm:$0xff] %vm24_vm1, %v474_v32  ;;  %v780_v37 = vpop.f32.mrb[14].mxu0  ;;  %v837_v38 = vpack.c.bf16 %v508_v34, %v507_v36 }
 0x11c   :  { %v477_v40 = vadd.f32 %v780_v37, %v235_v33  ;;  %v453_v41 = vpop.f32.mrb[15].mxu0 }
 0x11d   :  { %v476_v42 = vadd.f32 %v453_v41, %v234_v35  ;;  %838 = vmatpush3.bf16.msra.mxu1 %v837_v38  ;;  %v510_v43 = vld [vmem:[#allocation2 + $0x58] sm:$0xff] }
 0x11e   :  { %494 = vst.msk [vmem:[#allocation2 + $0x78] sm:$0xff] %vm24_vm1, %v477_v40  ;;  %839 = vmatprep.subr.bf16.mxu1 %v883_v39  ;;  %v509_v44 = vld [vmem:[#allocation2 + $0x50] sm:$0xff] }
 0x11f   :  { %493 = vst.msk [vmem:[#allocation2 + $0x70] sm:$0xff] %vm24_vm1, %v476_v42  ;;  %v840_v45 = vpack.c.bf16 %v510_v43, %v509_v44 }
 0x121   :  { %841 = vmatpush3.bf16.msra.mxu1 %v840_v45  ;;  %v512_v46 = vld [vmem:[#allocation2 + $0x68] sm:$0xff] }
 0x122   :  { %842 = vmatprep.subr.bf16.mxu1 %v883_v39  ;;  %v511_v47 = vld [vmem:[#allocation2 + $0x60] sm:$0xff] }
 0x123   :  { %v843_v48 = vpack.c.bf16 %v512_v46, %v511_v47 }
 0x125   :  { %844 = vmatpush3.bf16.msra.mxu1 %v843_v48  ;;  %v514_v49 = vld [vmem:[#allocation2 + $0x78] sm:$0xff] }
 0x126   :  { %845 = vmatprep.subr.bf16.mxu1 %v883_v39  ;;  %v513_v50 = vld [vmem:[#allocation2 + $0x70] sm:$0xff] }
 0x127   :  { %v846_v51 = vpack.c.bf16 %v514_v49, %v513_v50 }
 0x129   :  { %847 = vmatpush3.bf16.msra.mxu1 %v846_v51 }
 0x12c   :  { %814 = vmatmul.mubr.f32.vlgmr.msra.gmra.mrb[0].mxu1 %v498_v52 }
 0x1ff   :  { %v591_v55 = vpop.f32.mrb[0].mxu1 }
 0x200   :  { %v592_v56 = vadd.f32 %v591_v55, %v524_v54  ;;  %v815_v57 = vpop.f32.mrb[1].mxu1 }
 0x202   :  { %v595_v58 = vsub.f32 0.0, %v592_v56 }
 0x204   :  { %v596_v59 = vmul.f32 1.442695, %v595_v58 }
 0x206   :  { %854 = vpow2.f32 %v596_v59 }
 0x210   :  { %v855_v60 = vpop.eup %854 }
 0x211   :  { %v598_v39 = vadd.f32 1.0, %v855_v60 }
 0x213   :  { %856 = vrcp.f32 %v598_v39 }
 0x21d   :  { %v857_v61 = vpop.eup %856 }
 0x21e   :  { %602 = vst.msk [vmem:[#allocation4] sm:$0x1] %vm601_vm0, %v857_v61 }
 0x21f   :  { %869 = shalt.err (!%p866_p4)
}
 0x220   :  { %s870_s26 = scalar_lea.hbm %s1172_s4, 16 }
 0x221   :  { %p871_p5 = scmp.ne.s32.totalorder %s1172_s4, %s870_s26  ;;  %p874_p6 = scmp.lt.u32.totalorder %s870_s26, %s1172_s4 }
 0x223   :  { %p876_p7 = pnand %p874_p6, %p871_p5 }
 0x225   :  { %879 = shalt.err (!%p876_p7)
}
 0x226   :  { %612 = dma.vmem_to_hbm [thread:$0]  %s610_s23, 16, %s1172_s4, [#allocation5]  }
 0x227   :  { %880 = dma.done.wait [#allocation5], 16  }
 0x228   :  { %881 = vsyncadd [#allocation5], 4294967280 }
 0x229   :  { %616 = vsyncpa [#allocation5], 1 }

</bundles_post_ra>
